<compile_context>
chip_gen: v6e
topology: v6e:2x2x1
jax: 0.10.0
libtpu: 0.0.40
codegen_flags: <defaults>
</compile_context>

<pallas_src>
import functools

import jax
import jax.numpy as jnp
from jax.experimental import pallas as pl
from jax.experimental.pallas import tpu as pltpu

_LANES = 128
_RESIDENT_WEIGHT_BYTES = 16 * 1024 * 1024  # keep weight fully resident below this


def _round_up(x, m):
    return ((x + m - 1) // m) * m


def _perceptual_kernel(x_ref, w_ref, b_ref, o_ref):
    # x_ref: [tm, obs_dim], w_ref: [obs_dim, tn], b_ref: [1, tn], o_ref: [tm, tn]
    x = x_ref[...]
    if x.dtype != w_ref.dtype:
        # In-kernel cast (trace-time branch on static dtypes): avoids a whole
        # extra HBM read+write pass that a wrapper-side astype would add.
        x = x.astype(w_ref.dtype)
    acc = jnp.dot(x, w_ref[...], preferred_element_type=jnp.float32)  # MXU, f32 acc
    acc = acc + b_ref[...]                                            # f32 bias add
    o_ref[...] = jnp.maximum(acc, 0.0).astype(o_ref.dtype)            # ReLU + cast


def prepare_params(weight, bias, compute_dtype=jnp.float32):
    """One-time parameter prep (call at init, NOT in the forward hot path).

    Returns (w_t, b2, feature_dim):
      w_t: [obs_dim, f_pad]  pre-transposed weight, feature axis zero-padded to
           a multiple of 128 lanes, stored in `compute_dtype`.
      b2:  [1, f_pad]        bias (f32), zero-padded the same way.

    Note: compute_dtype=bfloat16 quantizes the weights (and the in-kernel x
    cast quantizes activations) before the MXU matmul; this is an intentional
    accuracy/bandwidth trade-off vs. the f32 PyTorch module.
    """
    feature_dim, obs_dim = weight.shape
    f_pad = _round_up(feature_dim, _LANES)
    w_t = jnp.zeros((obs_dim, f_pad), dtype=compute_dtype)
    w_t = w_t.at[:, :feature_dim].set(weight.T.astype(compute_dtype))
    b2 = jnp.zeros((1, f_pad), dtype=jnp.float32)
    b2 = b2.at[:, :feature_dim].set(bias.astype(jnp.float32))
    return w_t, b2, feature_dim


@functools.partial(
    jax.jit,
    static_argnames=("feature_dim", "tile_m", "tile_n", "out_dtype", "return_padded"),
)
def perceptual_forward(obs, w_t, b2, *, feature_dim, tile_m=1024, tile_n=None,
                       out_dtype=None, return_padded=False):
    """obs: [B, N, obs_dim]; (w_t, b2) from prepare_params().

    out_dtype: output dtype (default obs.dtype). Use bf16 to halve writeback
               bytes when the consumer accepts it.
    return_padded: if True, return [B, N, f_pad] (zero-padded feature columns)
               and let the consumer handle padding -> avoids an extra XLA
               read+write pass for the column slice when f_pad != feature_dim.
    """
    B, N, obs_dim = obs.shape
    K, f_pad = w_t.shape
    assert K == obs_dim
    out_dtype = jnp.dtype(out_dtype) if out_dtype is not None else obs.dtype
    M = B * N

    # Flatten only -- no pad, no dtype cast (both would be full extra HBM passes).
    x = obs.reshape(M, obs_dim)

    x_itemsize = jnp.dtype(x.dtype).itemsize
    w_itemsize = jnp.dtype(w_t.dtype).itemsize
    out_itemsize = jnp.dtype(out_dtype).itemsize

    # --- M tiling ------------------------------------------------------------
    sublane = 16 if jnp.dtype(x.dtype) == jnp.dtype(jnp.bfloat16) else 8
    tm = _round_up(max(1, min(tile_m, M)), sublane)
    grid_m = pl.cdiv(M, tm)  # ragged tail handled by Pallas block clipping

    # --- feature (N) tiling ----------------------------------------------------
    weight_bytes = obs_dim * f_pad * w_itemsize
    if tile_n is not None:
        tn = _round_up(min(tile_n, f_pad), _LANES)
    elif weight_bytes <= _RESIDENT_WEIGHT_BYTES or f_pad <= 256:
        tn = f_pad  # whole (pre-transposed, lane-padded) weight stays VMEM-resident
    else:
        # Tile features in 256-lane multiples (v6e/v7x MXU width) so the design
        # scales past v7x's 64 MiB VMEM for large layers.
        tn = (_RESIDENT_WEIGHT_BYTES // (obs_dim * w_itemsize)) // 256 * 256
        tn = int(min(max(256, tn), f_pad))
    grid_n = pl.cdiv(f_pad, tn)

    # Weight/bias: single-buffer when resident (constant index_map across the
    # whole grid); stream with default buffering only when the feature axis is
    # actually tiled.
    wb_spec_kwargs = {}
    if grid_n == 1:
        wb_spec_kwargs["pipeline_mode"] = pl.Buffered(1)

    # --- VMEM budget (generation-aware) ----------------------------------------
    try:
        vmem_cap = int(pltpu.get_tpu_info().vmem_capacity_bytes)
    except Exception:
        vmem_cap = 64 * 1024 * 1024  # conservative fallback = v7x per-TC physical
    w_bufs = 1 if grid_n == 1 else 2
    vmem_need = (2 * tm * obs_dim * x_itemsize          # double-buffered x tiles
                 + 2 * tm * tn * out_itemsize           # double-buffered out tiles
                 + w_bufs * obs_dim * tn * w_itemsize   # weight tile(s)
                 + w_bufs * tn * 4)                     # bias tile(s)
    vmem_limit = int(min(0.85 * vmem_cap, max(2 * vmem_need, 16 * 1024 * 1024)))

    out = pl.pallas_call(
        _perceptual_kernel,
        out_shape=jax.ShapeDtypeStruct((M, f_pad), out_dtype),
        grid_spec=pl.GridSpec(
            # Feature axis outermost so a weight tile stays put across the M sweep.
            grid=(grid_n, grid_m),
            in_specs=[
                pl.BlockSpec((tm, obs_dim), lambda j, i: (i, 0)),                 # streamed x tiles
                pl.BlockSpec((obs_dim, tn), lambda j, i: (0, j), **wb_spec_kwargs),  # weight
                pl.BlockSpec((1, tn), lambda j, i: (0, j), **wb_spec_kwargs),        # bias
            ],
            out_specs=pl.BlockSpec((tm, tn), lambda j, i: (i, j)),
        ),
        compiler_params=pltpu.CompilerParams(
            dimension_semantics=("parallel", "parallel"),  # megacore sharding on v7x
            vmem_limit_bytes=vmem_limit,
        ),
        cost_estimate=pl.CostEstimate(
            flops=2 * M * obs_dim * f_pad,
            transcendentals=0,
            bytes_accessed=(grid_n * M * obs_dim * x_itemsize
                            + obs_dim * f_pad * w_itemsize
                            + f_pad * 4
                            + M * f_pad * out_itemsize),
        ),
    )(x, w_t, b2)

    if return_padded or f_pad == feature_dim:
        # No extra slice pass; consumer sees lane-padded feature columns (zeros).
        out3 = out.reshape(B, N, f_pad)
        return out3 if return_padded else out3[..., :feature_dim]
    # f_pad != feature_dim: this slice is an extra XLA pass over the output;
    # prefer return_padded=True (or a feature_dim that is a 128-multiple) when
    # the downstream consumer can handle padded columns.
    return out[:, :feature_dim].reshape(B, N, feature_dim)


if __name__ == "__main__":
    # Small deterministic example: obs [batch, n_agents, obs_dim]
    batch_size, n_agents, obs_dim, feature_dim = 2, 4, 16, 32

    key = jax.random.PRNGKey(0)
    k_obs, k_w, k_b = jax.random.split(key, 3)

    obs = jax.random.normal(k_obs, (batch_size, n_agents, obs_dim), dtype=jnp.float32)
    # Deterministic init mimicking nn.Linear's uniform(-1/sqrt(in), 1/sqrt(in))
    bound = 1.0 / jnp.sqrt(jnp.float32(obs_dim))
    weight = jax.random.uniform(
        k_w, (feature_dim, obs_dim), minval=-bound, maxval=bound, dtype=jnp.float32
    )
    bias = jax.random.uniform(
        k_b, (feature_dim,), minval=-bound, maxval=bound, dtype=jnp.float32
    )

    # Plain-JAX reference (matches the PyTorch module)
    ref = jnp.maximum(jnp.einsum("bno,fo->bnf", obs, weight) + bias, 0.0)

    # f32 path: matches the PyTorch module's numerics.
    w_t, b2, fdim = prepare_params(weight, bias, compute_dtype=jnp.float32)
    z = perceptual_forward(obs, w_t, b2, feature_dim=fdim)
    z = jax.block_until_ready(z)
    assert z.shape == (batch_size, n_agents, feature_dim)
    assert jnp.allclose(z, ref, atol=1e-5, rtol=1e-5)

    # bf16 weights + bf16 output: in-kernel activation cast (no extra HBM pass),
    # f32 MXU accumulation, halved weight + writeback bytes. Intentionally
    # quantized relative to the f32 module -> looser tolerance.
    w_t16, b216, _ = prepare_params(weight, bias, compute_dtype=jnp.bfloat16)
    z16 = perceptual_forward(obs, w_t16, b216, feature_dim=fdim,
                             out_dtype=jnp.bfloat16)
    z16 = jax.block_until_ready(z16)
    assert z16.shape == (batch_size, n_agents, feature_dim)
    assert jnp.allclose(z16.astype(jnp.float32), ref, atol=5e-2, rtol=5e-2)

    print("KERNEL_OK")
</pallas_src>

<mosaic_0001>
module attributes {stable_mosaic.version = 11 : i64} {
  func.func @_perceptual_kernel(%arg0: i32, %arg1: i32, %arg2: memref<8x16xf32, #tpu.memory_space<vmem>>, %arg3: memref<16x128xf32, #tpu.memory_space<vmem>>, %arg4: memref<1x128xf32, #tpu.memory_space<vmem>>, %arg5: memref<8x128xf32, #tpu.memory_space<vmem>>) attributes {dimension_semantics = [#tpu.dimension_semantics<parallel>, #tpu.dimension_semantics<parallel>], iteration_bounds = array<i64: 1, 1>, scalar_prefetch = 0 : i64, scratch_operands = 0 : i64, tpu.core_type = #tpu.core_type<tc>, window_params = [{transform_indices = @transform_0, window_bounds = array<i64: 8, 16>}, {pipeline_mode = #tpu.pipeline_mode<synchronous>, transform_indices = @transform_1, window_bounds = array<i64: 16, 128>}, {pipeline_mode = #tpu.pipeline_mode<synchronous>, transform_indices = @transform_2, window_bounds = array<i64: 1, 128>}, {transform_indices = @transform_3, window_bounds = array<i64: 8, 128>}]} {
    %c0 = arith.constant 0 : index
    %c0_0 = arith.constant 0 : index
    %0 = vector.load %arg2[%c0, %c0_0] : memref<8x16xf32, #tpu.memory_space<vmem>>, vector<8x16xf32>
    %c0_1 = arith.constant 0 : index
    %c0_2 = arith.constant 0 : index
    %1 = vector.load %arg3[%c0_1, %c0_2] : memref<16x128xf32, #tpu.memory_space<vmem>>, vector<16x128xf32>
    %cst = arith.constant dense<0.000000e+00> : vector<8x128xf32>
    %2 = tpu.matmul %0, %1, %cst {dimension_numbers = #tpu.dot_dimension_numbers<[1], [0], [0], [1], [0, 0, 1, 1], [], []>} : vector<8x16xf32>, vector<16x128xf32>, vector<8x128xf32> -> vector<8x128xf32>
    %c0_3 = arith.constant 0 : index
    %c0_4 = arith.constant 0 : index
    %3 = vector.load %arg4[%c0_3, %c0_4] : memref<1x128xf32, #tpu.memory_space<vmem>>, vector<1x128xf32>
    %4 = vector.broadcast %3 : vector<1x128xf32> to vector<8x128xf32>
    %5 = arith.addf %2, %4 : vector<8x128xf32>
    %cst_5 = arith.constant 0.000000e+00 : f32
    %6 = vector.broadcast %cst_5 : f32 to vector<8x128xf32>
    %7 = arith.maximumf %5, %6 : vector<8x128xf32>
    %c0_6 = arith.constant 0 : index
    %c0_7 = arith.constant 0 : index
    %8 = vector.load %arg5[%c0_6, %c0_7] : memref<8x128xf32, #tpu.memory_space<vmem>>, vector<8x128xf32>
    tpu.vector_store %arg5[%c0_6, %c0_7], %7 {strides = array<i32>} : memref<8x128xf32, #tpu.memory_space<vmem>>, vector<8x128xf32>,
    return
  }
  func.func @transform_0(%arg0: i32, %arg1: i32) -> (i32, i32) {
    %c0_i32 = arith.constant 0 : i32
    %c0_i32_0 = arith.constant 0 : i32
    return %arg1, %c0_i32 : i32, i32
  }
  func.func @transform_1(%arg0: i32, %arg1: i32) -> (i32, i32) {
    %c0_i32 = arith.constant 0 : i32
    %c0_i32_0 = arith.constant 0 : i32
    return %c0_i32, %arg0 : i32, i32
  }
  func.func @transform_2(%arg0: i32, %arg1: i32) -> (i32, i32) {
    %c0_i32 = arith.constant 0 : i32
    %c0_i32_0 = arith.constant 0 : i32
    return %c0_i32, %arg0 : i32, i32
  }
  func.func @transform_3(%arg0: i32, %arg1: i32) -> (i32, i32) {
    %c0_i32 = arith.constant 0 : i32
    return %arg1, %arg0 : i32, i32
  }
}

</mosaic_0001>

<bundles_post_ra>
// kernel: perceptual_forward.1
= control target key start
LH: loop header
LB: loop body
LE: loop exit
PB: predicated region body
PF: predicated region fallthrough
CT: control target
= control target key end

     0   :  { %8 = vsyncpa [#allocation3], 0  ;;  %s267_s0 = inlined_call_operand.hbm [shape: f32[8,16], index: 0, kind: input, shape index: {}]   ;;  %s268_s1 = inlined_call_operand.hbm [shape: f32[16,128], index: 1, kind: input, shape index: {}]   ;;  %s269_s2 = inlined_call_operand.vmem [shape: f32[1,128], index: 2, kind: input, shape index: {}]   ;;  %s270_s3 = inlined_call_operand.hbm [shape: f32[8,128], index: 3, kind: output, shape index: {}]  }
   0x1   :  { %9 = vsyncpa [#allocation6], 0 }
   0x2   :  { %10 = vsyncpa [#allocation4], 0  ;;  %s228_s12 = smov [#allocation2]   ;;  %s229_s14 = smov [#allocation5]  }
   0x3   :  { %s17_s13 = sshll.u32 %s228_s12, 4  ;;  %s26_s15 = sshll.u32 %s229_s14, 4  ;;  %s18_s13 = int_to_ptr.vmem [resolvable:$true] %s17_s13  ;;  %s27_s15 = int_to_ptr.vmem [resolvable:$true] %s26_s15 }
   0x4   :  { %s170_s16 = scalar_lea.vmem %s18_s13, 128  ;;  %p175_p1 = scmp.lt.s32.totalorder %s18_s13, %s18_s13 }
   0x5   :  { %p171_p0 = scmp.ne.s32.totalorder %s18_s13, %s170_s16  ;;  %p176_p2 = scmp.lt.s32.totalorder %s170_s16, %s170_s16 }
   0x7   :  { %p177_p3 = por %p176_p2, %p175_p1 }
   0x9   :  { %p178_p4 = pnand %p177_p3, %p171_p0 }
   0xb   :  { %181 = shalt.err (!%p178_p4)
}
   0xc   :  { %20 = dma.hbm_to_vmem [thread:$0]  %s267_s0, 128, %s18_s13, [#allocation3]  }
   0xd   :  { %s190_s19 = scalar_lea.vmem %s27_s15, 256  ;;  %p195_p6 = scmp.lt.s32.totalorder %s27_s15, %s27_s15 }
   0xe   :  { %p191_p5 = scmp.ne.s32.totalorder %s27_s15, %s190_s19  ;;  %p196_p7 = scmp.lt.s32.totalorder %s190_s19, %s190_s19 }
  0x10   :  { %p197_p8 = por %p196_p7, %p195_p6 }
  0x12   :  { %p198_p9 = pnand %p197_p8, %p191_p5 }
  0x14   :  { %201 = shalt.err (!%p198_p9)
}
  0x15   :  { %s230_s20 = smov 128   ;;  %s231_s21 = smov 8  }
  0x16   :  { %32 = dma.hbm_to_vmem [thread:$0]  %s268_s1, 256, %s27_s15, [#allocation6], %s230_s20, %s230_s20, %s231_s21  }
  0x17   :  { %222 = dma.done.wait [#allocation3], 128  }
  0x18   :  { %223 = vsyncadd [#allocation3], 4294967168 }
  0x19   :  { %224 = dma.done.wait [#allocation6], 256  }
  0x1a   :  { %225 = vsyncadd [#allocation6], 4294967040  ;;  %v232_v0 = vmov 0.0   ;;  %vm233_vm0 = vmmov 0   ;;  %v43_v1 = vld [vmem:[#allocation5 + $0x8] sm:$0xff]  ;;  %v42_v2 = vld [vmem:[#allocation5] sm:$0xff] }
  0x1b   :  { %148 = vmatprep.subr.mxu0 %v232_v0  ;;  %152 = vmatprep.mubr.msk.f32.mxu0 %vm233_vm0, %v232_v0  ;;  %v41_v3 = vld [vmem:[#allocation2] sm:$0xff]  ;;  %vm51_vm1 = vcmask 130048   ;;  %s234_s1 = smov [#allocation7]  }
  0x1c   :  { %149 = vmatpush3.msra.mxu0 %v43_v1  ;;  %v143_v4 = vld [vmem:[%s269_s2] ss:$0 sm:$0xff]  ;;  %s133_s25 = sshll.u32 %s234_s1, 4  ;;  %s134_s25 = int_to_ptr.vmem [resolvable:$true] %s133_s25 }
  0x1d   :  { %150 = vmatprep.subr.mxu0 %v232_v0  ;;  %s202_s26 = scalar_lea.vmem %s134_s25, 128  ;;  %p207_p11 = scmp.lt.s32.totalorder %s134_s25, %s134_s25 }
  0x1e   :  { %151 = vmatpush3.msra.mxu0 %v42_v2  ;;  %p203_p10 = scmp.ne.s32.totalorder %s134_s25, %s202_s26  ;;  %p208_p12 = scmp.lt.s32.totalorder %s202_s26, %s202_s26 }
  0x1f   :  { %153 = vmatmul.mubr.msk.f32.vlgmr.msra.gmra.mxu0 %vm51_vm1, %v41_v3 }
  0x20   :  { %p209_p13 = por %p208_p12, %p207_p11 }
  0x22   :  { %p210_p0 = pnand %p209_p13, %p203_p10 }
  0xdf   :  { %v121_v5 = vpop.f32.mrf.mxu0 }
  0xe0   :  { %v122_v6 = vadd.f32 %v143_v4, %v121_v5 }
  0xe1   :  { %v154_v7 = vpop.f32.mrf.mxu0 }
  0xe2   :  { %v125_v8 = vmax.f32 %v122_v6, 0.0 }
  0xe4   :  { %126 = vst [vmem:[#allocation7] sm:$0xff] %v125_v8 }
  0xe5   :  { %213 = shalt.err (!%p210_p0)
}
  0xe6   :  { %136 = dma.vmem_to_hbm [thread:$0]  %s134_s25, 128, %s270_s3, [#allocation4]  }
  0xe7   :  { %226 = dma.done.wait [#allocation4], 128  }
  0xe8   :  { %227 = vsyncadd [#allocation4], 4294967168 }
  0xe9   :  { %140 = vsyncpa [#allocation3], 1 }
  0xea   :  { %141 = vsyncpa [#allocation6], 1 }
  0xeb   :  { %142 = vsyncpa [#allocation4], 1 }

</bundles_post_ra>
